<compile_context>
chip_gen: v6e
topology: v6e:2x2x1
jax: 0.10.0
libtpu: 0.0.40
codegen_flags: <defaults>
</compile_context>

<pallas_src>
import functools

import jax
import jax.numpy as jnp
from jax.experimental import pallas as pl
from jax.experimental.pallas import tpu as pltpu


def _round_up(n, m):
    return ((n + m - 1) // m) * m


def _vq_kernel(x_ref, cbt_ref, cb2_ref, idx_ref, err_ref, *, use_bf16_matmul):
    tr, lanes = idx_ref.shape                  # packed output tile: (tile_n//128, 128)
    x = x_ref[...].astype(jnp.float32)         # (TN, D)
    cb2 = cb2_ref[...]                         # (1, K) == ||c_k||^2 (hoisted)
    k = cb2.shape[-1]

    if use_bf16_matmul:
        # v6e / v7x native-bf16 MXU path (may flip indices on near-ties).
        dots = jnp.dot(x.astype(jnp.bfloat16),
                       cbt_ref[...].astype(jnp.bfloat16),
                       preferred_element_type=jnp.float32)       # (TN, K) on MXU
    else:
        dots = jnp.dot(x, cbt_ref[...].astype(jnp.float32),
                       preferred_element_type=jnp.float32)       # (TN, K) on MXU

    # argmin_k ||x - c_k||^2 == argmin_k (||c_k||^2 - 2 x.c_k)   (||x||^2 dropped)
    part = cb2 - 2.0 * dots                                      # (TN, K)

    # Re-pack rows lane-dense: (TN, K) -> (TN//128, 128, K) is a pure
    # leading-dim split (minor layout unchanged).
    part3 = part.reshape(tr, lanes, k)
    min_part = jnp.min(part3, axis=-1, keepdims=True)            # (tr, 128, 1)

    # First index attaining the minimum (matches argmin tie-breaking).
    iota_k = jax.lax.broadcasted_iota(jnp.int32, part3.shape, 2)
    idx = jnp.min(jnp.where(part3 <= min_part, iota_k, k), axis=-1)  # (tr, 128)

    x3 = x.reshape(tr, lanes, x.shape[-1])
    x2 = jnp.sum(x3 * x3, axis=-1)                               # (tr, 128)
    # ||x - c_idx||^2 read off the distance matrix; clamp against cancellation.
    err = jnp.maximum(x2 + jnp.squeeze(min_part, axis=-1), 0.0)  # (tr, 128)

    idx_ref[...] = idx.astype(jnp.int32)
    err_ref[...] = err


def vector_quantize_pallas(x, codebook, *, tile_n=1024, use_bf16_matmul=False):
    """Returns (z_q, (vq_loss, commit_loss), indices) like VectorQuantize.forward."""
    orig_shape = x.shape
    D = x.shape[-1]
    z_e = x.reshape(-1, D)
    N = z_e.shape[0]
    K = codebook.shape[0]

    # Lane-dense packed outputs need N padded to a multiple of 128; multi-tile
    # grids additionally need tile_n // 128 to be a multiple of 8 so the packed
    # output block is (8m, 128)-aligned.
    n128 = _round_up(N, 128)
    if n128 <= tile_n:
        tile_n = n128
    else:
        tile_n = _round_up(tile_n, 1024)
    n_pad = _round_up(N, tile_n)
    if n_pad != N:
        z_e = jnp.pad(z_e, ((0, n_pad - N), (0, 0)))

    num_tiles = n_pad // tile_n
    tr = tile_n // 128            # packed output rows per tile
    R = n_pad // 128              # packed output rows total

    # Hoisted, grid-invariant codebook preprocessing (done once in XLA).
    cb_f32 = codebook.astype(jnp.float32)
    cb_t = cb_f32.T                                    # (D, K)
    cb2 = jnp.sum(cb_f32 * cb_f32, axis=-1)[None, :]   # (1, K)

    # TODO(synk): for very large codebooks (K*D*4 plus tile_n*K*4 intermediates
    # approaching v7x's 32 MiB scoped VMEM) add a K grid axis ("arbitrary",
    # last) with a running min/argmin VMEM accumulator instead of keeping the
    # whole codebook resident.

    est = 4 * (2 * tile_n * D + 2 * (D * K + K) + 6 * tile_n * K + 4 * tile_n)
    vmem_limit = int(min(64 * 1024 * 1024, max(32 * 1024 * 1024, 2 * est)))

    idx_packed, err_packed = pl.pallas_call(
        functools.partial(_vq_kernel, use_bf16_matmul=use_bf16_matmul),
        out_shape=(
            jax.ShapeDtypeStruct((R, 128), jnp.int32),
            jax.ShapeDtypeStruct((R, 128), jnp.float32),
        ),
        grid_spec=pltpu.PrefetchScalarGridSpec(
            num_scalar_prefetch=0,
            grid=(num_tiles,),
            in_specs=[
                pl.BlockSpec((tile_n, D), lambda i: (i, 0)),   # x tile
                pl.BlockSpec((D, K), lambda i: (0, 0)),        # codebook^T, resident
                pl.BlockSpec((1, K), lambda i: (0, 0)),        # ||c||^2, resident
            ],
            out_specs=(
                pl.BlockSpec((tr, 128), lambda i: (i, 0)),     # indices, lane-dense
                pl.BlockSpec((tr, 128), lambda i: (i, 0)),     # squared err, lane-dense
            ),
        ),
        compiler_params=pltpu.CompilerParams(
            dimension_semantics=("parallel",),     # N-tiles independent -> both v7x TCs
            vmem_limit_bytes=vmem_limit,
        ),
    )(z_e, cb_t, cb2)

    idx_flat = idx_packed.reshape(-1)[:N]
    err_flat = err_packed.reshape(-1)[:N]

    mse = jnp.sum(err_flat) / jnp.float32(N * D)
    # In the forward pass vq_loss and commit_loss are numerically identical
    # (they differ only in which side is detached for gradients).
    vq_loss = mse
    commit_loss = mse

    # Row gather replaces the in-kernel one-hot matmul (D is small).
    z_q = jnp.take(codebook, idx_flat, axis=0).astype(x.dtype).reshape(orig_shape)
    indices = idx_flat.reshape(orig_shape[:-1])
    return z_q, (vq_loss, commit_loss), indices


def _vq_reference(x, codebook):
    """Pure-JAX reference matching the PyTorch forward (direct (x-c)^2 form)."""
    z_e = x.reshape(-1, x.shape[-1]).astype(jnp.float32)
    cb = codebook.astype(jnp.float32)
    d = jnp.sum((z_e[:, None, :] - cb[None, :, :]) ** 2, axis=-1)
    idx = jnp.argmin(d, axis=-1).astype(jnp.int32)
    z_q = jnp.take(cb, idx, axis=0)
    mse = jnp.mean((z_q - z_e) ** 2)
    return z_q.astype(x.dtype).reshape(x.shape), mse, idx.reshape(x.shape[:-1])


class VectorQuantizeJax:
    """Minimal forward-only port of torchtools VectorQuantize (dim=-1 path)."""

    def __init__(self, embedding_size, k, key):
        # nn.Embedding(k, embedding_size).weight.data.uniform_(-1/k, 1/k)
        self.codebook = jax.random.uniform(
            key, (k, embedding_size), dtype=jnp.float32,
            minval=-1.0 / k, maxval=1.0 / k,
        )
        # TODO(synk): the EMA codebook update (_updateEMA) is a training-time
        # buffer mutation and is not part of the returned forward values.

    @functools.partial(jax.jit, static_argnums=0)
    def __call__(self, x):
        return vector_quantize_pallas(x, self.codebook)


if __name__ == "__main__":
    key = jax.random.PRNGKey(0)
    k_cb, k_x, k_x2, k_x3 = jax.random.split(key, 4)

    embedding_size = 32
    k = 128
    vq = VectorQuantizeJax(embedding_size, k, k_cb)

    # NHWC-style feature map (channels-last), flattened inside to (N=128, 32).
    x = jax.random.normal(k_x, (2, 8, 8, embedding_size), dtype=jnp.float32)
    z_q, (vq_loss, commit_loss), indices = vq(x)
    jax.block_until_ready((z_q, vq_loss, commit_loss, indices))

    assert z_q.shape == x.shape and z_q.dtype == x.dtype
    assert indices.shape == x.shape[:-1] and indices.dtype == jnp.int32
    assert vq_loss.shape == () and commit_loss.shape == ()
    assert bool(jnp.isfinite(vq_loss)) and bool(jnp.isfinite(commit_loss))
    assert bool(jnp.all((indices >= 0) & (indices < k)))

    zq_ref, mse_ref, idxr = _vq_reference(x, vq.codebook)
    match = float(jnp.mean((indices == idxr).astype(jnp.float32)))
    assert match >= 0.99, f"index agreement too low: {match}"
    assert bool(jnp.allclose(vq_loss, mse_ref, rtol=1e-4, atol=1e-5))

    # Padding path: N = 3*5*7 = 105 rows (not a multiple of 128).
    x2 = jax.random.normal(k_x2, (3, 5, 7, embedding_size), dtype=jnp.float32)
    z_q2, (vq_loss2, _), idx2 = vector_quantize_pallas(x2, vq.codebook)
    jax.block_until_ready((z_q2, vq_loss2, idx2))
    _, mse_ref2, idxr2 = _vq_reference(x2, vq.codebook)
    assert z_q2.shape == x2.shape and idx2.shape == x2.shape[:-1]
    assert float(jnp.mean((idx2 == idxr2).astype(jnp.float32))) >= 0.99
    assert bool(jnp.allclose(vq_loss2, mse_ref2, rtol=1e-4, atol=1e-5))

    # Multi-tile path: N = 2*21*25 = 1050 -> padded to 2 tiles of 1024.
    x3 = jax.random.normal(k_x3, (2, 21, 25, embedding_size), dtype=jnp.float32)
    z_q3, (vq_loss3, _), idx3 = vector_quantize_pallas(x3, vq.codebook)
    jax.block_until_ready((z_q3, vq_loss3, idx3))
    _, mse_ref3, idxr3 = _vq_reference(x3, vq.codebook)
    assert z_q3.shape == x3.shape and idx3.shape == x3.shape[:-1]
    assert float(jnp.mean((idx3 == idxr3).astype(jnp.float32))) >= 0.99
    assert bool(jnp.allclose(vq_loss3, mse_ref3, rtol=1e-4, atol=1e-5))

    print("KERNEL_OK")
</pallas_src>

<mosaic_0001>
module attributes {stable_mosaic.version = 11 : i64} {
  func.func @_vq_kernel(%arg0: i32, %arg1: memref<128x32xf32, #tpu.memory_space<vmem>>, %arg2: memref<32x128xf32, #tpu.memory_space<vmem>>, %arg3: memref<1x128xf32, #tpu.memory_space<vmem>>, %arg4: memref<1x128xi32, #tpu.memory_space<vmem>>, %arg5: memref<1x128xf32, #tpu.memory_space<vmem>>) attributes {dimension_semantics = [#tpu.dimension_semantics<parallel>], iteration_bounds = array<i64: 1>, scalar_prefetch = 0 : i64, scratch_operands = 0 : i64, tpu.core_type = #tpu.core_type<tc>, window_params = [{transform_indices = @transform_0, window_bounds = array<i64: 128, 32>}, {pipeline_mode = #tpu.pipeline_mode<synchronous>, transform_indices = @transform_1, window_bounds = array<i64: 32, 128>}, {pipeline_mode = #tpu.pipeline_mode<synchronous>, transform_indices = @transform_2, window_bounds = array<i64: 1, 128>}, {transform_indices = @transform_3, window_bounds = array<i64: 1, 128>}, {transform_indices = @transform_4, window_bounds = array<i64: 1, 128>}]} {
    %c0 = arith.constant 0 : index
    %c0_0 = arith.constant 0 : index
    %0 = vector.load %arg1[%c0, %c0_0] : memref<128x32xf32, #tpu.memory_space<vmem>>, vector<128x32xf32>
    %c0_1 = arith.constant 0 : index
    %c0_2 = arith.constant 0 : index
    %1 = vector.load %arg3[%c0_1, %c0_2] : memref<1x128xf32, #tpu.memory_space<vmem>>, vector<1x128xf32>
    %c0_3 = arith.constant 0 : index
    %c0_4 = arith.constant 0 : index
    %2 = vector.load %arg2[%c0_3, %c0_4] : memref<32x128xf32, #tpu.memory_space<vmem>>, vector<32x128xf32>
    %cst = arith.constant dense<0.000000e+00> : vector<128x128xf32>
    %3 = tpu.matmul %0, %2, %cst {dimension_numbers = #tpu.dot_dimension_numbers<[1], [0], [0], [1], [0, 0, 1, 1], [], []>} : vector<128x32xf32>, vector<32x128xf32>, vector<128x128xf32> -> vector<128x128xf32>
    %cst_5 = arith.constant 2.000000e+00 : f32
    %4 = vector.broadcast %cst_5 : f32 to vector<128x128xf32>
    %5 = arith.mulf %4, %3 : vector<128x128xf32>
    %6 = vector.broadcast %1 : vector<1x128xf32> to vector<128x128xf32>
    %7 = arith.subf %6, %5 : vector<128x128xf32>
    %8 = vector.shape_cast %7 : vector<128x128xf32> to vector<1x128x128xf32>
    %cst_6 = arith.constant dense<0x7F800000> : vector<1x128xf32>
    %9 = vector.multi_reduction <minimumf>, %8, %cst_6 [2] : vector<1x128x128xf32> to vector<1x128xf32>
    %10 = vector.shape_cast %9 : vector<1x128xf32> to vector<1x128x1xf32>
    %11 = tpu.iota {dimensions = array<i32: 2>} : vector<1x128x128xi32>
    %12 = vector.broadcast %10 : vector<1x128x1xf32> to vector<1x128x128xf32>
    %13 = arith.cmpf ole, %8, %12 : vector<1x128x128xf32>
    %c128_i32 = arith.constant 128 : i32
    %14 = vector.broadcast %c128_i32 : i32 to vector<1x128x128xi32>
    %15 = arith.select %13, %11, %14 : vector<1x128x128xi1>, vector<1x128x128xi32>
    %cst_7 = arith.constant dense<2147483647> : vector<1x128xi32>
    %16 = vector.multi_reduction <minsi>, %15, %cst_7 [2] : vector<1x128x128xi32> to vector<1x128xi32>
    %17 = vector.shape_cast %0 : vector<128x32xf32> to vector<1x128x32xf32>
    %18 = arith.mulf %17, %17 : vector<1x128x32xf32>
    %cst_8 = arith.constant dense<0.000000e+00> : vector<1x128xf32>
    %19 = vector.multi_reduction <add>, %18, %cst_8 [2] : vector<1x128x32xf32> to vector<1x128xf32>
    %20 = vector.shape_cast %10 : vector<1x128x1xf32> to vector<1x128xf32>
    %21 = arith.addf %19, %20 : vector<1x128xf32>
    %cst_9 = arith.constant 0.000000e+00 : f32
    %22 = vector.broadcast %cst_9 : f32 to vector<1x128xf32>
    %23 = arith.maximumf %21, %22 : vector<1x128xf32>
    %c0_10 = arith.constant 0 : index
    %c0_11 = arith.constant 0 : index
    %24 = vector.load %arg4[%c0_10, %c0_11] : memref<1x128xi32, #tpu.memory_space<vmem>>, vector<1x128xi32>
    tpu.vector_store %arg4[%c0_10, %c0_11], %16 {strides = array<i32>} : memref<1x128xi32, #tpu.memory_space<vmem>>, vector<1x128xi32>,
    %c0_12 = arith.constant 0 : index
    %c0_13 = arith.constant 0 : index
    %25 = vector.load %arg5[%c0_12, %c0_13] : memref<1x128xf32, #tpu.memory_space<vmem>>, vector<1x128xf32>
    tpu.vector_store %arg5[%c0_12, %c0_13], %23 {strides = array<i32>} : memref<1x128xf32, #tpu.memory_space<vmem>>, vector<1x128xf32>,
    return
  }
  func.func @transform_0(%arg0: i32) -> (i32, i32) {
    %c0_i32 = arith.constant 0 : i32
    %c0_i32_0 = arith.constant 0 : i32
    return %arg0, %c0_i32 : i32, i32
  }
  func.func @transform_1(%arg0: i32) -> (i32, i32) {
    %c0_i32 = arith.constant 0 : i32
    %c0_i32_0 = arith.constant 0 : i32
    %c0_i32_1 = arith.constant 0 : i32
    return %c0_i32, %c0_i32_0 : i32, i32
  }
  func.func @transform_2(%arg0: i32) -> (i32, i32) {
    %c0_i32 = arith.constant 0 : i32
    %c0_i32_0 = arith.constant 0 : i32
    %c0_i32_1 = arith.constant 0 : i32
    return %c0_i32, %c0_i32_0 : i32, i32
  }
  func.func @transform_3(%arg0: i32) -> (i32, i32) {
    %c0_i32 = arith.constant 0 : i32
    %c0_i32_0 = arith.constant 0 : i32
    return %arg0, %c0_i32 : i32, i32
  }
  func.func @transform_4(%arg0: i32) -> (i32, i32) {
    %c0_i32 = arith.constant 0 : i32
    %c0_i32_0 = arith.constant 0 : i32
    return %arg0, %c0_i32 : i32, i32
  }
}

</mosaic_0001>

<bundles_post_ra>
// kernel: a_call__.1
= control target key start
LH: loop header
LB: loop body
LE: loop exit
PB: predicated region body
PF: predicated region fallthrough
CT: control target
= control target key end

     0   :  { %10 = vsyncpa [#allocation3], 0  ;;  %s1653_s0 = inlined_call_operand.hbm [shape: f32[128,32], index: 0, kind: input, shape index: {}]   ;;  %s1654_s1 = inlined_call_operand.hbm [shape: f32[32,128], index: 1, kind: input, shape index: {}]   ;;  %s1655_s2 = inlined_call_operand.vmem [shape: f32[1,128], index: 2, kind: input, shape index: {}]   ;;  %s1656_s3 = inlined_call_operand.vmem [shape: s32[1,128], index: 3, kind: output, shape index: {0}]   ;;  %s1657_s4 = inlined_call_operand.vmem [shape: f32[1,128], index: 4, kind: output, shape index: {1}]  }
   0x1   :  { %11 = vsyncpa [#allocation5], 0  ;;  %s1025_s15 = smov [#allocation2]  }
   0x2   :  { %s17_s16 = sshll.u32 %s1025_s15, 4  ;;  %s18_s16 = int_to_ptr.vmem [resolvable:$true] %s17_s16 }
   0x3   :  { %s989_s17 = scalar_lea.vmem %s18_s16, 2048  ;;  %p994_p1 = scmp.lt.s32.totalorder %s18_s16, %s18_s16 }
   0x4   :  { %p990_p0 = scmp.ne.s32.totalorder %s18_s16, %s989_s17  ;;  %p995_p2 = scmp.lt.s32.totalorder %s989_s17, %s989_s17 }
   0x6   :  { %p996_p3 = por %p995_p2, %p994_p1 }
   0x8   :  { %p997_p4 = pnand %p996_p3, %p990_p0 }
   0xa   :  { %1000 = shalt.err (!%p997_p4)
}
   0xb   :  { %s1026_s18 = smov 128   ;;  %s1027_s19 = smov 8  }
   0xc   :  { %23 = dma.hbm_to_vmem [thread:$0]  %s1653_s0, 2048, %s18_s16, [#allocation3], %s1026_s18, %s1026_s18, %s1027_s19  }
   0xd   :  { %s1028_s22 = smov [#allocation4]  }
   0xe   :  { %s29_s23 = sshll.u32 %s1028_s22, 4  ;;  %s30_s23 = int_to_ptr.vmem [resolvable:$true] %s29_s23 }
   0xf   :  { %s1009_s24 = scalar_lea.vmem %s30_s23, 512  ;;  %p1014_p6 = scmp.lt.s32.totalorder %s30_s23, %s30_s23 }
  0x10   :  { %p1010_p5 = scmp.ne.s32.totalorder %s30_s23, %s1009_s24  ;;  %p1015_p7 = scmp.lt.s32.totalorder %s1009_s24, %s1009_s24 }
  0x12   :  { %p1016_p8 = por %p1015_p7, %p1014_p6 }
  0x14   :  { %p1017_p9 = pnand %p1016_p8, %p1010_p5 }
  0x16   :  { %1020 = shalt.err (!%p1017_p9)
}
  0x17   :  { %35 = dma.hbm_to_vmem [thread:$0]  %s1654_s1, 512, %s30_s23, [#allocation5], %s1026_s18, %s1026_s18, %s1027_s19  }
  0x18   :  { %1021 = dma.done.wait [#allocation3], 2048  }
  0x19   :  { %1022 = vsyncadd [#allocation3], 4294965248 }
  0x1a   :  { %1023 = dma.done.wait [#allocation5], 512  }
  0x1b   :  { %1024 = vsyncadd [#allocation5], 4294966784  ;;  %v64_v0 = vld [vmem:[#allocation4 + $0x18] sm:$0xff]  ;;  %v63_v1 = vld [vmem:[#allocation4 + $0x10] sm:$0xff]  ;;  %vm65_vm0 = vcmask 261120  }
  0x1c   :  { %937 = vmatprep.subr.mxu0 %v64_v0  ;;  %969 = vmatprep.subr.mxu1 %v64_v0  ;;  %v62_v2 = vld [vmem:[#allocation4 + $0x8] sm:$0xff]  ;;  %v61_v3 = vld [vmem:[#allocation4] sm:$0xff]  ;;  %v1068_v8 = vld [vmem:[#allocation2 + $0x10] sm:$0xff] }
  0x1d   :  { %938 = vmatpush3.msra.mxu0 %v64_v0  ;;  %973 = vmatpush3.msra.mxu1 %v64_v0  ;;  %v1060_v4 = vld [vmem:[#allocation2] sm:$0xff]  ;;  %v1064_v6 = vld [vmem:[#allocation2 + $0x8] sm:$0xff]  ;;  %v1070_v9 = vld [vmem:[#allocation2 + $0x50] sm:$0xff] }
  0x1e   :  { %939 = vmatprep.subr.mxu0 %v63_v1  ;;  %970 = vmatprep.subr.mxu1 %v63_v1  ;;  %v1062_v5 = vld [vmem:[#allocation2 + $0x40] sm:$0xff]  ;;  %v1066_v7 = vld [vmem:[#allocation2 + $0x48] sm:$0xff]  ;;  %v1082_v10 = vld [vmem:[#allocation2 + $0x18] sm:$0xff] }
  0x1f   :  { %940 = vmatpush3.msra.mxu0 %v63_v1  ;;  %974 = vmatpush3.msra.mxu1 %v63_v1  ;;  %v1086_v11 = vld [vmem:[#allocation2 + $0x58] sm:$0xff]  ;;  %v1088_v12 = vld [vmem:[#allocation2 + $0x20] sm:$0xff]  ;;  %v1098_v14 = vld [vmem:[#allocation2 + $0x28] sm:$0xff] }
  0x20   :  { %941 = vmatprep.subr.mxu0 %v62_v2  ;;  %971 = vmatprep.subr.mxu1 %v62_v2  ;;  %v1090_v13 = vld [vmem:[#allocation2 + $0x60] sm:$0xff]  ;;  %v1102_v15 = vld [vmem:[#allocation2 + $0x68] sm:$0xff]  ;;  %v1104_v16 = vld [vmem:[#allocation2 + $0x30] sm:$0xff] }
  0x21   :  { %942 = vmatpush3.msra.mxu0 %v62_v2  ;;  %975 = vmatpush3.msra.mxu1 %v62_v2  ;;  %v1106_v17 = vld [vmem:[#allocation2 + $0x70] sm:$0xff]  ;;  %v1114_v18 = vld [vmem:[#allocation2 + $0x38] sm:$0xff]  ;;  %v916_v22 = vld [vmem:[%s1655_s2] ss:$0 sm:$0xff] }
  0x22   :  { %943 = vmatprep.subr.mxu0 %v61_v3  ;;  %972 = vmatprep.subr.mxu1 %v61_v3  ;;  %v1118_v19 = vld [vmem:[#allocation2 + $0x78] sm:$0xff] }
  0x23   :  { %944 = vmatpush3.msra.mxu0 %v61_v3  ;;  %976 = vmatpush3.msra.mxu1 %v61_v3 }
  0x24   :  { %945 = vmatprep.mubr.msk.f32.mxu0 %vm65_vm0, %v1060_v4  ;;  %957 = vmatprep.mubr.msk.f32.mxu1 %vm65_vm0, %v1062_v5 }
  0x25   :  { %946 = vmatmul.mubr.msk.f32.vlgmr.msra.gmra.mxu0 %vm65_vm0, %v1064_v6  ;;  %958 = vmatmul.mubr.msk.f32.vlgmr.msra.gmra.mxu1 %vm65_vm0, %v1066_v7 }
  0x26   :  { %948 = vmatprep.mubr.msk.f32.mxu0 %vm65_vm0, %v1068_v8  ;;  %960 = vmatprep.mubr.msk.f32.mxu1 %vm65_vm0, %v1070_v9 }
  0x29   :  { %949 = vmatmul.mubr.msk.f32.gmra.mxu0 %vm65_vm0, %v1082_v10  ;;  %961 = vmatmul.mubr.msk.f32.gmra.mxu1 %vm65_vm0, %v1086_v11 }
  0x2a   :  { %951 = vmatprep.mubr.msk.f32.mxu0 %vm65_vm0, %v1088_v12  ;;  %963 = vmatprep.mubr.msk.f32.mxu1 %vm65_vm0, %v1090_v13 }
  0x2d   :  { %952 = vmatmul.mubr.msk.f32.gmra.mxu0 %vm65_vm0, %v1098_v14  ;;  %964 = vmatmul.mubr.msk.f32.gmra.mxu1 %vm65_vm0, %v1102_v15 }
  0x2e   :  { %954 = vmatprep.mubr.msk.f32.mxu0 %vm65_vm0, %v1104_v16  ;;  %966 = vmatprep.mubr.msk.f32.mxu1 %vm65_vm0, %v1106_v17 }
  0x31   :  { %955 = vmatmul.mubr.msk.f32.gmra.mxu0 %vm65_vm0, %v1114_v18  ;;  %967 = vmatmul.mubr.msk.f32.gmra.mxu1 %vm65_vm0, %v1118_v19 }
  0xe5   :  { %v947_v20 = vpop.f32.mrf.mxu0  ;;  %v959_v21 = vpop.f32.mrf.mxu1 }
  0xe6   :  { %v260_v23 = vmul.f32 2.0, %v947_v20  ;;  %v268_v24 = vmul.f32 2.0, %v959_v21  ;;  %v1658_v21 = vlaneseq }
  0xe7   :  { %v180_v25 = vpop.f32.mrf.mxu0  ;;  %v220_v26 = vpop.f32.mrf.mxu1 }
  0xe8   :  { %v259_v27 = vmul.f32 2.0, %v180_v25  ;;  %v1127_v28 = vsub.f32 %v916_v22, %v268_v24  ;;  %v1129_v29 = vsub.f32 %v916_v22, %v260_v23  ;;  %v267_v36 = vmul.f32 2.0, %v220_v26 }
  0xe9   :  { %v950_v30 = vpop.f32.mrf.mxu0  ;;  %v962_v31 = vpop.f32.mrf.mxu1  ;;  %v1170_v23 = vand.u32 127, %v1658_v21 }
  0xea   :  { %v262_v32 = vmul.f32 2.0, %v950_v30  ;;  %315 = vmin.xlane.f32.xlu1 %v1127_v28  ;;  %299 = vmin.xlane.f32.xlu0 %v1129_v29  ;;  %v270_v33 = vmul.f32 2.0, %v962_v31  ;;  %v281_v37 = vsub.f32 %v916_v22, %v259_v27  ;;  %v1135_v45 = vsub.f32 %v916_v22, %v267_v36 }
  0xeb   :  { %v190_v34 = vpop.f32.mrf.mxu0  ;;  %v230_v35 = vpop.f32.mrf.mxu1 }
  0xec   :  { %v284_v38 = vsub.f32 %v916_v22, %v262_v32  ;;  %v261_v40 = vmul.f32 2.0, %v190_v34  ;;  %v269_v41 = vmul.f32 2.0, %v230_v35  ;;  %v1133_v42 = vsub.f32 %v916_v22, %v270_v33 }
  0xed   :  { %v953_v39 = vpop.f32.mrf.mxu0  ;;  %v965_v44 = vpop.f32.mrf.mxu1 }
  0xee   :  { %297 = vmin.xlane.f32.xlu0 %v281_v37  ;;  %303 = vmin.xlane.f32.xlu1 %v284_v38  ;;  %v264_v47 = vmul.f32 2.0, %v953_v39  ;;  %v1139_v49 = vsub.f32 %v916_v22, %v269_v41  ;;  %v1141_v50 = vsub.f32 %v916_v22, %v261_v40  ;;  %v272_v58 = vmul.f32 2.0, %v965_v44 }
  0xef   :  { %v200_v43 = vpop.f32.mrf.mxu0  ;;  %v240_v52 = vpop.f32.mrf.mxu1 }
  0xf0   :  { %v263_v48 = vmul.f32 2.0, %v200_v43  ;;  %v1145_v55 = vsub.f32 %v916_v22, %v264_v47  ;;  %v271_v59 = vmul.f32 2.0, %v240_v52  ;;  %v1157_v1 = vsub.f32 %v916_v22, %v272_v58 }
  0xf1   :  { %v956_v46 = vpop.f32.mrf.mxu0  ;;  %v968_v57 = vpop.f32.mrf.mxu1 }
  0xf2   :  { %313 = vmin.xlane.f32.xlu0 %v1135_v45  ;;  %319 = vmin.xlane.f32.xlu1 %v1133_v42  ;;  %v266_v53 = vmul.f32 2.0, %v956_v46  ;;  %v1147_v56 = vsub.f32 %v916_v22, %v263_v48  ;;  %v274_v63 = vmul.f32 2.0, %v968_v57  ;;  %v1159_v2 = vsub.f32 %v916_v22, %v271_v59 }
  0xf3   :  { %v210_v51 = vpop.f32.mrf.mxu0  ;;  %v250_v62 = vpop.f32.mrf.mxu1 }
  0xf4   :  { %v265_v54 = vmul.f32 2.0, %v210_v51  ;;  %v1151_v60 = vsub.f32 %v916_v22, %v266_v53  ;;  %v273_v0 = vmul.f32 2.0, %v250_v62  ;;  %v1163_v3 = vsub.f32 %v916_v22, %v274_v63 }
  0xf6   :  { %317 = vmin.xlane.f32.xlu0 %v1139_v49  ;;  %301 = vmin.xlane.f32.xlu1 %v1141_v50  ;;  %v1153_v61 = vsub.f32 %v916_v22, %v265_v54  ;;  %v1165_v20 = vsub.f32 %v916_v22, %v273_v0 }
  0xfa   :  { %307 = vmin.xlane.f32.xlu1 %v1145_v55  ;;  %305 = vmin.xlane.f32.xlu0 %v1147_v56 }
  0xfe   :  { %311 = vmin.xlane.f32.xlu1 %v1151_v60  ;;  %309 = vmin.xlane.f32.xlu0 %v1153_v61 }
 0x102   :  { %323 = vmin.xlane.f32.xlu1 %v1157_v1  ;;  %321 = vmin.xlane.f32.xlu0 %v1159_v2 }
 0x106   :  { %327 = vmin.xlane.f32.xlu1 %v1163_v3  ;;  %325 = vmin.xlane.f32.xlu0 %v1165_v20 }
 0x173   :  { %v1172_v24 = vpop.xlane.xlu1 %315  ;;  %v1174_v25 = vpop.xlane.xlu0 %299 }
 0x174   :  { %1667 = vst [vmem:[#allocation8_spill] sm:$0xff] %v1172_v24  ;;  %vm340_vm1 = vcmp.le.f32.partialorder %v1127_v28, %v1172_v24  ;;  %vm332_vm2 = vcmp.le.f32.partialorder %v1129_v29, %v1174_v25  ;;  %v589_v24 = vmul.f32 %v1068_v8, %v1068_v8 }
 0x175   :  { %v1181_v22 = vsel %vm340_vm1, %v1170_v23, 128  ;;  %v1184_v26 = vsel %vm332_vm2, %v1170_v23, 128 }
 0x176   :  { %v378_v27 = vshra.s32 %v1184_v26, 16  ;;  %v490_v29 = vshra.s32 %v1181_v22, 16 }
 0x177   :  { %v1187_v30 = vpop.xlane.xlu0 %297  ;;  %v1189_v31 = vpop.xlane.xlu1 %303 }
 0x178   :  { %vm331_vm3 = vcmp.le.f32.partialorder %v281_v37, %v1187_v30  ;;  %vm334_vm4 = vcmp.le.f32.partialorder %v284_v38, %v1189_v31  ;;  %v1193_v28 = vcvt.s32.f32 %v378_v27  ;;  %v1213_v38 = vcvt.s32.f32 %v490_v29 }
 0x179   :  { %v1197_v32 = vsel %vm331_vm3, %v1170_v23, 128  ;;  %v1200_v33 = vsel %vm334_vm4, %v1170_v23, 128 }
 0x17a   :  { %381 = vmin.xlane.f32.xlu1 %v1193_v28  ;;  %v364_v34 = vshra.s32 %v1197_v32, 16  ;;  %v406_v37 = vshra.s32 %v1200_v33, 16 }
 0x17b   :  { %v1204_v35 = vpop.xlane.xlu0 %313  ;;  %v1206_v36 = vpop.xlane.xlu1 %319 }
 0x17c   :  { %1668 = vst [vmem:[#allocation9_spill] sm:$0xff] %v1204_v35  ;;  %1669 = vst [vmem:[#allocation10_spill] sm:$0xff] %v1206_v36  ;;  %vm339_vm5 = vcmp.le.f32.partialorder %v1135_v45, %v1204_v35  ;;  %vm342_vm6 = vcmp.le.f32.partialorder %v1133_v42, %v1206_v36  ;;  %v1215_v39 = vcvt.s32.f32 %v364_v34  ;;  %v1230_v42 = vcvt.s32.f32 %v406_v37 }
 0x17d   :  { %v1218_v40 = vsel %vm339_vm5, %v1170_v23, 128  ;;  %v1221_v41 = vsel %vm342_vm6, %v1170_v23, 128 }
 0x17e   :  { %493 = vmin.xlane.f32.xlu1 %v1213_v38  ;;  %367 = vmin.xlane.f32.xlu0 %v1215_v39  ;;  %v476_v43 = vshra.s32 %v1218_v40, 16  ;;  %v518_v47 = vshra.s32 %v1221_v41, 16 }
 0x17f   :  { %v1226_v44 = vpop.xlane.xlu0 %317  ;;  %v1228_v45 = vpop.xlane.xlu1 %301 }
 0x180   :  { %1670 = vst [vmem:[#allocation11_spill] sm:$0xff] %v1226_v44  ;;  %vm341_vm7 = vcmp.le.f32.partialorder %v1139_v49, %v1226_v44  ;;  %vm333_vm8 = vcmp.le.f32.partialorder %v1141_v50, %v1228_v45  ;;  %v1236_v46 = vcvt.s32.f32 %v476_v43  ;;  %v1257_v54 = vcvt.s32.f32 %v518_v47 }
 0x181   :  { %v1240_v48 = vsel %vm341_vm7, %v1170_v23, 128  ;;  %v1243_v51 = vsel %vm333_vm8, %v1170_v23, 128 }
 0x182   :  { %409 = vmin.xlane.f32.xlu1 %v1230_v42  ;;  %479 = vmin.xlane.f32.xlu0 %v1236_v46  ;;  %v392_v52 = vshra.s32 %v1243_v51, 16  ;;  %v504_v50 = vshra.s32 %v1240_v48, 16 }
 0x183   :  { %v1248_v49 = vpop.xlane.xlu1 %307  ;;  %v1250_v53 = vpop.xlane.xlu0 %305 }
 0x184   :  { %vm336_vm9 = vcmp.le.f32.partialorder %v1145_v55, %v1248_v49  ;;  %vm335_vm10 = vcmp.le.f32.partialorder %v1147_v56, %v1250_v53  ;;  %v1259_v57 = vcvt.s32.f32 %v392_v52  ;;  %v1274_v56 = vcvt.s32.f32 %v504_v50 }
 0x185   :  { %v1262_v58 = vsel %vm336_vm9, %v1170_v23, 128  ;;  %v1265_v59 = vsel %vm335_vm10, %v1170_v23, 128 }
 0x186   :  { %521 = vmin.xlane.f32.xlu1 %v1257_v54  ;;  %395 = vmin.xlane.f32.xlu0 %v1259_v57  ;;  %v434_v62 = vshra.s32 %v1262_v58, 16  ;;  %v420_v27 = vshra.s32 %v1265_v59, 16 }
 0x187   :  { %v1270_v55 = vpop.xlane.xlu1 %311  ;;  %v1272_v63 = vpop.xlane.xlu0 %309 }
 0x188   :  { %vm338_vm11 = vcmp.le.f32.partialorder %v1151_v60, %v1270_v55  ;;  %vm337_vm12 = vcmp.le.f32.partialorder %v1153_v61, %v1272_v63  ;;  %v1280_v0 = vcvt.s32.f32 %v434_v62  ;;  %v1303_v52 = vcvt.s32.f32 %v420_v27 }
 0x189   :  { %v1284_v29 = vsel %vm338_vm11, %v1170_v23, 128  ;;  %v1287_v34 = vsel %vm337_vm12, %v1170_v23, 128 }
 0x18a   :  { %437 = vmin.xlane.f32.xlu1 %v1280_v0  ;;  %507 = vmin.xlane.f32.xlu0 %v1274_v56  ;;  %v462_v37 = vshra.s32 %v1284_v29, 16  ;;  %v448_v61 = vshra.s32 %v1287_v34, 16 }
 0x18b   :  { %v1292_v60 = vpop.xlane.xlu1 %323  ;;  %v1294_v43 = vpop.xlane.xlu0 %321 }
 0x18c   :  { %1671 = vst [vmem:[#allocation12_spill] sm:$0xff] %v1292_v60  ;;  %1672 = vst [vmem:[#allocation13_spill] sm:$0xff] %v1294_v43  ;;  %vm344_vm13 = vcmp.le.f32.partialorder %v1157_v1, %v1292_v60  ;;  %vm343_vm14 = vcmp.le.f32.partialorder %v1159_v2, %v1294_v43  ;;  %v1301_v47 = vcvt.s32.f32 %v462_v37  ;;  %v1318_v2 = vcvt.s32.f32 %v448_v61 }
 0x18d   :  { %v1306_v50 = vsel %vm344_vm13, %v1170_v23, 128  ;;  %v1309_v62 = vsel %vm343_vm14, %v1170_v23, 128 }
 0x18e   :  { %465 = vmin.xlane.f32.xlu1 %v1301_v47  ;;  %423 = vmin.xlane.f32.xlu0 %v1303_v52  ;;  %v546_v21 = vshra.s32 %v1306_v50, 16  ;;  %v532_v37 = vshra.s32 %v1309_v62, 16 }
 0x18f   :  { %v1314_v1 = vpop.xlane.xlu1 %327  ;;  %v1316_v60 = vpop.xlane.xlu0 %325 }
 0x190   :  { %1673 = vst [vmem:[#allocation14_spill] sm:$0xff] %v1314_v1  ;;  %1674 = vst [vmem:[#allocation15_spill] sm:$0xff] %v1316_v60  ;;  %vm346_vm15 = vcmp.le.f32.partialorder %v1163_v3, %v1314_v1  ;;  %vm345_vm1 = vcmp.le.f32.partialorder %v1165_v20, %v1316_v60  ;;  %v1324_v27 = vcvt.s32.f32 %v546_v21  ;;  %v588_v3 = vmul.f32 %v1064_v6, %v1064_v6 }
 0x191   :  { %v1328_v43 = vsel %vm346_vm15, %v1170_v23, 128  ;;  %v1331_v36 = vsel %vm345_vm1, %v1170_v23, 128  ;;  %v1340_v21 = vcvt.s32.f32 %v532_v37  ;;  %v587_v60 = vmul.f32 %v1060_v4, %v1060_v4 }
 0x192   :  { %549 = vmin.xlane.f32.xlu1 %v1324_v27  ;;  %451 = vmin.xlane.f32.xlu0 %v1318_v2  ;;  %v574_v61 = vshra.s32 %v1328_v43, 16  ;;  %v560_v1 = vshra.s32 %v1331_v36, 16  ;;  %v606_v44 = vsel %vm65_vm0, %v588_v3, 0.0  ;;  %v609_v6 = vsel %vm65_vm0, %v589_v24, 0.0 }
 0x193   :  { %v603_v37 = vsel %vm65_vm0, %v587_v60, 0.0  ;;  %v591_v3 = vmul.f32 %v1088_v12, %v1088_v12  ;;  %v593_v60 = vmul.f32 %v1104_v16, %v1104_v16  ;;  %v595_v12 = vmul.f32 %v1062_v5, %v1062_v5 }
 0x194   :  { %v1338_v20 = vcvt.s32.f32 %v574_v61  ;;  %v1350_v35 = vcvt.s32.f32 %v560_v1  ;;  %v590_v61 = vmul.f32 %v1082_v10, %v1082_v10  ;;  %v594_v1 = vmul.f32 %v1114_v18, %v1114_v18 }
 0x195   :  { %v615_v8 = vsel %vm65_vm0, %v591_v3, 0.0  ;;  %v621_v10 = vsel %vm65_vm0, %v593_v60, 0.0  ;;  %v598_v5 = vmul.f32 %v1086_v11, %v1086_v11  ;;  %v377_v3 = vand.u32 65535, %v1184_v26 }
 0x196   :  { %577 = vmin.xlane.f32.xlu1 %v1338_v20  ;;  %535 = vmin.xlane.f32.xlu0 %v1340_v21  ;;  %v612_v4 = vsel %vm65_vm0, %v590_v61, 0.0  ;;  %v597_v61 = vmul.f32 %v1070_v9, %v1070_v9  ;;  %v489_v9 = vand.u32 65535, %v1181_v22 }
 0x198   :  { %v633_v18 = vsel %vm65_vm0, %v597_v61, 0.0  ;;  %v491_v26 = vcvt.s32.f32 %v489_v9  ;;  %v602_v61 = vmul.f32 %v1118_v19, %v1118_v19 }
 0x19a   :  { %607 = vadd.xlane.f32.xlu1 %v606_v44  ;;  %563 = vmin.xlane.f32.xlu0 %v1350_v35  ;;  %v592_v44 = vmul.f32 %v1098_v14, %v1098_v14  ;;  %v627_v14 = vsel %vm65_vm0, %v595_v12, 0.0  ;;  %v363_v12 = vand.u32 65535, %v1197_v32 }
 0x19c   :  { %v618_v24 = vsel %vm65_vm0, %v592_v44, 0.0  ;;  %v599_v44 = vmul.f32 %v1090_v13, %v1090_v13 }
 0x19e   :  { %610 = vadd.xlane.f32.xlu1 %v609_v6  ;;  %604 = vadd.xlane.f32.xlu0 %v603_v37  ;;  %v624_v6 = vsel %vm65_vm0, %v594_v1, 0.0  ;;  %v596_v37 = vmul.f32 %v1066_v7, %v1066_v7  ;;  %v379_v7 = vcvt.s32.f32 %v377_v3  ;;  %v600_v1 = vmul.f32 %v1102_v15, %v1102_v15 }
 0x19f   :  { %v475_v15 = vand.u32 65535, %v1218_v40 }
 0x1a0   :  { %v630_v16 = vsel %vm65_vm0, %v596_v37, 0.0 }
 0x1a2   :  { %613 = vadd.xlane.f32.xlu1 %v612_v4  ;;  %v636_v4 = vsel %vm65_vm0, %v598_v5, 0.0 }
 0x1a6   :  { %616 = vadd.xlane.f32.xlu1 %v615_v8 }
 0x1aa   :  { %619 = vadd.xlane.f32.xlu1 %v618_v24 }
 0x1ae   :  { %622 = vadd.xlane.f32.xlu1 %v621_v10  ;;  %v639_v10 = vsel %vm65_vm0, %v599_v44, 0.0 }
 0x1b2   :  { %625 = vadd.xlane.f32.xlu1 %v624_v6  ;;  %v365_v6 = vcvt.s32.f32 %v363_v12 }
 0x1b6   :  { %628 = vadd.xlane.f32.xlu1 %v627_v14  ;;  %v601_v14 = vmul.f32 %v1106_v17, %v1106_v17  ;;  %v405_v17 = vand.u32 65535, %v1200_v33  ;;  %v391_v33 = vand.u32 65535, %v1243_v51  ;;  %v433_v51 = vand.u32 65535, %v1262_v58 }
 0x1b7   :  { %v531_v58 = vand.u32 65535, %v1309_v62 }
 0x1b8   :  { %v407_v5 = vcvt.s32.f32 %v405_v17  ;;  %v393_v9 = vcvt.s32.f32 %v391_v33 }
 0x1ba   :  { %631 = vadd.xlane.f32.xlu1 %v630_v16  ;;  %v477_v16 = vcvt.s32.f32 %v475_v15  ;;  %v447_v15 = vand.u32 65535, %v1287_v34  ;;  %v559_v34 = vand.u32 65535, %v1331_v36 }
 0x1bc   :  { %v561_v17 = vcvt.s32.f32 %v559_v34 }
 0x1be   :  { %634 = vadd.xlane.f32.xlu1 %v633_v18 }
 0x1c2   :  { %637 = vadd.xlane.f32.xlu1 %v636_v4  ;;  %v517_v4 = vand.u32 65535, %v1221_v41  ;;  %v503_v41 = vand.u32 65535, %v1240_v48  ;;  %v419_v48 = vand.u32 65535, %v1265_v59  ;;  %v461_v59 = vand.u32 65535, %v1284_v29 }
 0x1c4   :  { %v519_v19 = vcvt.s32.f32 %v517_v4 }
 0x203   :  { %v1383_v8 = vpop.xlane.xlu1 %381 }
 0x204   :  { %vm383_vm2 = vcmp.eq.f32.partialorder %v1193_v28, %v1383_v8  ;;  %v642_v28 = vsel %vm65_vm0, %v600_v1, 0.0 }
 0x205   :  { %v384_v24 = vsel %vm383_vm2, %v379_v7, inf  ;;  %vm692_vm2 = vcmask 130112  }
 0x206   :  { %385 = vmin.xlane.f32.xlu1 %v384_v24 }
 0x207   :  { %v1390_v11 = vpop.xlane.xlu1 %493  ;;  %v1392_v60 = vpop.xlane.xlu0 %367 }
 0x208   :  { %vm495_vm3 = vcmp.eq.f32.partialorder %v1213_v38, %v1390_v11  ;;  %vm369_vm4 = vcmp.eq.f32.partialorder %v1215_v39, %v1392_v60  ;;  %v645_v39 = vsel %vm65_vm0, %v601_v14, 0.0 }
 0x209   :  { %v496_v13 = vsel %vm495_vm3, %v491_v26, inf  ;;  %v370_v37 = vsel %vm369_vm4, %v365_v6, inf  ;;  %vm699_vm3 = vcmask 195712   ;;  %vm706_vm4 = vcmask 261312  }
 0x20a   :  { %640 = vadd.xlane.f32.xlu1 %v639_v10  ;;  %497 = vmin.xlane.f32.xlu0 %v496_v13  ;;  %v421_v13 = vcvt.s32.f32 %v419_v48  ;;  %v715_v48 = vadd.s32 4294967256, %v1170_v23 }
 0x20b   :  { %v1402_v22 = vpop.xlane.xlu0 %479  ;;  %v1408_v32 = vpop.xlane.xlu1 %409 }
 0x20c   :  { %vm481_vm5 = vcmp.eq.f32.partialorder %v1236_v46, %v1402_v22  ;;  %vm411_vm6 = vcmp.eq.f32.partialorder %v1230_v42, %v1408_v32  ;;  %v648_v46 = vsel %vm65_vm0, %v602_v61, 0.0 }
 0x20d   :  { %v482_v18 = vsel %vm481_vm5, %v477_v16, inf  ;;  %v412_v7 = vsel %vm411_vm6, %v407_v5, inf  ;;  %vm713_vm5 = vcmask 326912   ;;  %vm720_vm6 = vcmask 392512  }
 0x20e   :  { %643 = vadd.xlane.f32.xlu1 %v642_v28  ;;  %371 = vmin.xlane.f32.xlu0 %v370_v37 }
 0x20f   :  { %v1412_v38 = vpop.xlane.xlu0 %395  ;;  %v1420_v40 = vpop.xlane.xlu1 %521 }
 0x210   :  { %vm523_vm7 = vcmp.eq.f32.partialorder %v1257_v54, %v1420_v40  ;;  %vm397_vm8 = vcmp.eq.f32.partialorder %v1259_v57, %v1412_v38  ;;  %v505_v54 = vcvt.s32.f32 %v503_v41  ;;  %v435_v57 = vcvt.s32.f32 %v433_v51 }
 0x211   :  { %v524_v44 = vsel %vm523_vm7, %v519_v19, inf  ;;  %v398_v24 = vsel %vm397_vm8, %v393_v9, inf  ;;  %v1675_v41 = vlaneseq  ;;  %vm727_vm7 = vcmask 458112  }
 0x212   :  { %646 = vadd.xlane.f32.xlu1 %v645_v39  ;;  %483 = vmin.xlane.f32.xlu0 %v482_v18  ;;  %v545_v39 = vand.u32 65535, %v1306_v50  ;;  %v573_v50 = vand.u32 65535, %v1328_v43  ;;  %v687_v43 = vadd.s32 4294967288, %v1170_v23  ;;  %vm734_vm8 = vcmask 523712  }
 0x213   :  { %v1424_v3 = vpop.xlane.xlu0 %507  ;;  %v1436_v10 = vpop.xlane.xlu1 %437 }
 0x214   :  { %vm509_vm0 = vcmp.eq.f32.partialorder %v1274_v56, %v1424_v3  ;;  %vm439_vm9 = vcmp.eq.f32.partialorder %v1280_v0, %v1436_v10  ;;  %v533_v0 = vcvt.s32.f32 %v531_v58  ;;  %v722_v58 = vadd.s32 4294967248, %v1170_v23 }
 0x215   :  { %v510_v1 = vsel %vm509_vm0, %v505_v54, inf  ;;  %v440_v12 = vsel %vm439_vm9, %v435_v57, inf  ;;  %v708_v57 = vadd.s32 4294967264, %v1170_v23  ;;  %vm741_vm0 = vcmask 589312  }
 0x216   :  { %649 = vadd.xlane.f32.xlu1 %v648_v46  ;;  %413 = vmin.xlane.f32.xlu0 %v412_v7  ;;  %vm748_vm9 = vcmask 654912  }
 0x217   :  { %v1431_v42 = vpop.xlane.xlu0 %423  ;;  %v1451_v6 = vpop.xlane.xlu1 %465 }
 0x218   :  { %vm425_vm10 = vcmp.eq.f32.partialorder %v1303_v52, %v1431_v42  ;;  %vm467_vm12 = vcmp.eq.f32.partialorder %v1301_v47, %v1451_v6  ;;  %v463_v52 = vcvt.s32.f32 %v461_v59  ;;  %v547_v47 = vcvt.s32.f32 %v545_v39 }
 0x219   :  { %v426_v28 = vsel %vm425_vm10, %v421_v13, inf  ;;  %v729_v59 = vadd.s32 4294967240, %v1170_v23  ;;  %vm755_vm10 = vcmask 720512  }
 0x21a   :  { %525 = vmin.xlane.f32.xlu0 %v524_v44  ;;  %v468_v37 = vsel %vm467_vm12, %v463_v52, inf  ;;  %vm769_vm12 = vcmask 851712  }
 0x21b   :  { %v1439_v26 = vpop.xlane.xlu0 %451  ;;  %v1459_v62 = vpop.xlane.xlu1 %549 }
 0x21c   :  { %vm453_vm13 = vcmp.eq.f32.partialorder %v1318_v2, %v1439_v26  ;;  %vm551_vm14 = vcmp.eq.f32.partialorder %v1324_v27, %v1459_v62  ;;  %v575_v27 = vcvt.s32.f32 %v573_v50  ;;  %v388_v50 = vcvt.f32.s32 %v1383_v8 }
 0x21d   :  { %v552_v61 = vsel %vm551_vm14, %v547_v47, inf  ;;  %v750_v47 = vadd.s32 4294967216, %v1170_v23  ;;  %vm783_vm14 = vcmask 982912  }
 0x21e   :  { %399 = vmin.xlane.f32.xlu0 %v398_v24  ;;  %v1475_v24 = vshrl.u32 %v1675_v41, 7 }
 0x21f   :  { %v1446_v56 = vpop.xlane.xlu0 %535  ;;  %v1469_v2 = vpop.xlane.xlu1 %577 }
 0x220   :  { %vm537_vm11 = vcmp.eq.f32.partialorder %v1340_v21, %v1446_v56  ;;  %v449_v21 = vcvt.s32.f32 %v447_v15  ;;  %vm579_vm1 = vcmp.eq.f32.partialorder %v1338_v20, %v1469_v2  ;;  %v694_v20 = vadd.s32 4294967280, %v1170_v23 }
 0x221   :  { %v538_v14 = vsel %vm537_vm11, %v533_v0, inf  ;;  %v580_v46 = vsel %vm579_vm1, %v575_v27, inf  ;;  %v1494_v0 = vsub.s32 %v1170_v23, %v1475_v24  ;;  %v736_v15 = vadd.s32 4294967232, %v1170_v23 }
 0x222   :  { %511 = vmin.xlane.f32.xlu0 %v510_v1  ;;  %v454_v16 = vsel %vm453_vm13, %v449_v21, inf  ;;  %v701_v1 = vadd.s32 4294967272, %v1170_v23  ;;  %v1505_v39 = vsub.s32 %v708_v57, %v1475_v24  ;;  %v1520_v27 = vsub.s32 %v729_v59, %v1475_v24 }
 0x223   :  { %v1464_v29 = vpop.xlane.xlu0 %563  ;;  %v608_v5 = vpop.xlane.xlu1 %607  ;;  %vm762_vm11 = vcmask 786112   ;;  %vm776_vm13 = vcmask 917312  }
 0x224   :  { %vm565_vm15 = vcmp.eq.f32.partialorder %v1350_v35, %v1464_v29  ;;  %v1499_v52 = vsub.s32 %v701_v1, %v1475_v24 }
 0x225   :  { %v566_v18 = vsel %vm565_vm15, %v561_v17, inf  ;;  %v757_v17 = vadd.s32 4294967208, %v1170_v23  ;;  %vm790_vm15 = vcmask 1048512  }
 0x226   :  { %441 = vmin.xlane.f32.xlu0 %v440_v12  ;;  %v1485_v12 = vsub.s32 %v687_v43, %v1475_v24 }
 0x227   :  { %v611_v36 = vpop.xlane.xlu1 %610  ;;  %v605_v51 = vpop.xlane.xlu0 %604 }
 0x228   :  { %v651_v13 = vadd.f32 %v605_v51, %v1187_v30  ;;  %v743_v30 = vadd.s32 4294967224, %v1170_v23  ;;  %v653_v21 = vadd.f32 %v611_v36, %v1228_v45  ;;  %v374_v45 = vcvt.f32.s32 %v1392_v60 }
 0x229   :  { %v1530_v60 = vsub.s32 %v750_v47, %v1475_v24 }
 0x22a   :  { %427 = vmin.xlane.f32.xlu0 %v426_v28  ;;  %v1490_v28 = vsub.s32 %v694_v20, %v1475_v24  ;;  %v667_v34 = vmax.f32 %v651_v13, 0.0  ;;  %v1527_v36 = vsub.s32 %v743_v30, %v1475_v24  ;;  %v669_v8 = vmax.f32 %v653_v21, 0.0 }
 0x22b   :  { %v614_v4 = vpop.xlane.xlu1 %613  ;;  %v389_v20 = vshll.u32 %v388_v50, 16  ;;  %v375_v51 = vshll.u32 %v374_v45, 16  ;;  %v1679_v45 = vld [vmem:[#allocation10_spill] sm:$0xff] }
 0x22c   :  { %v812_v41 = vrot.slane %v667_v34, %v1494_v0 }
 0x22e   :  { %539 = vmin.xlane.f32.xlu0 %v538_v14  ;;  %v652_v14 = vadd.f32 %v608_v5, %v1174_v25  ;;  %v654_v25 = vadd.f32 %v614_v4, %v1189_v31  ;;  %v1524_v31 = vsub.s32 %v736_v15, %v1475_v24 }
 0x22f   :  { %v617_v7 = vpop.xlane.xlu1 %616 }
 0x230   :  { %v670_v43 = vmax.f32 %v654_v25, 0.0 }
 0x232   :  { %469 = vmin.xlane.f32.xlu0 %v468_v37  ;;  %v826_v34 = vrot.slane %v670_v43, %v1499_v52 }
 0x233   :  { %v620_v19 = vpop.xlane.xlu1 %619 }
 0x234   :  { %v656_v5 = vadd.f32 %v620_v19, %v1248_v49  ;;  %v1537_v19 = vsub.s32 %v757_v17, %v1475_v24 }
 0x236   :  { %455 = vmin.xlane.f32.xlu0 %v454_v16  ;;  %v1508_v16 = vsub.s32 %v715_v48, %v1475_v24  ;;  %v672_v13 = vmax.f32 %v656_v5, 0.0 }
 0x237   :  { %v623_v33 = vpop.xlane.xlu1 %622 }
 0x238   :  { %v657_v49 = vadd.f32 %v623_v33, %v1272_v63  ;;  %v821_v63 = vrot.slane %v669_v8, %v1490_v28  ;;  %v836_v5 = vrot.slane %v672_v13, %v1508_v16 }
 0x23a   :  { %553 = vmin.xlane.f32.xlu0 %v552_v61  ;;  %v1513_v61 = vsub.s32 %v722_v58, %v1475_v24  ;;  %v1676_v58 = vld [vmem:[#allocation9_spill] sm:$0xff] }
 0x23b   :  { %v626_v35 = vpop.xlane.xlu1 %625 }
 0x23c   :  { %v658_v57 = vadd.f32 %v626_v35, %v1270_v55 }
 0x23e   :  { %567 = vmin.xlane.f32.xlu0 %v566_v18  ;;  %v655_v18 = vadd.f32 %v617_v7, %v1250_v53  ;;  %v764_v53 = vadd.s32 4294967200, %v1170_v23  ;;  %v771_v7 = vadd.s32 4294967192, %v1170_v23  ;;  %v674_v50 = vmax.f32 %v658_v57, 0.0 }
 0x23f   :  { %v629_v44 = vpop.xlane.xlu1 %628 }
 0x240   :  { %v671_v1 = vmax.f32 %v655_v18, 0.0  ;;  %v659_v59 = vadd.f32 %v629_v44, %v1676_v58  ;;  %v1547_v47 = vsub.s32 %v764_v53, %v1475_v24  ;;  %v1550_v55 = vsub.s32 %v771_v7, %v1475_v24  ;;  %v1680_v53 = vld [vmem:[#allocation13_spill] sm:$0xff]  ;;  %v1681_v58 = vld [vmem:[#allocation12_spill] sm:$0xff] }
 0x241   :  { %v673_v44 = vmax.f32 %v657_v49, 0.0 }
 0x242   :  { %581 = vmin.xlane.f32.xlu0 %v580_v46  ;;  %v668_v46 = vmax.f32 %v652_v14, 0.0  ;;  %v1677_v14 = vld [vmem:[#allocation8_spill] sm:$0xff]  ;;  %v831_v17 = vrot.slane %v671_v1, %v1505_v39 }
 0x243   :  { %v632_v9 = vpop.xlane.xlu1 %631 }
 0x244   :  { %v816_v48 = vrot.slane %v668_v46, %v1485_v12  ;;  %v660_v15 = vadd.f32 %v632_v9, %v1677_v14  ;;  %v1678_v9 = vld [vmem:[#allocation11_spill] sm:$0xff]  ;;  %v778_v46 = vadd.s32 4294967184, %v1170_v23 }
 0x246   :  { %v817_v35 = vsel %vm692_vm2, %v816_v48, %v812_v41  ;;  %v676_v8 = vmax.f32 %v660_v15, 0.0 }
 0x247   :  { %v1478_v54 = vpop.xlane.xlu1 %634  ;;  %v822_v49 = vsel %vm699_vm3, %v821_v63, %v817_v35 }
 0x248   :  { %v661_v25 = vadd.f32 %v1478_v54, %v1678_v9  ;;  %v827_v1 = vsel %vm706_vm4, %v826_v34, %v822_v49  ;;  %v785_v9 = vadd.s32 4294967176, %v1170_v23  ;;  %v856_v63 = vrot.slane %v676_v8, %v1527_v36 }
 0x249   :  { %v832_v13 = vsel %vm713_vm5, %v831_v17, %v827_v1  ;;  %v1682_v17 = vld [vmem:[#allocation15_spill] sm:$0xff] }
 0x24a   :  { %v677_v57 = vmax.f32 %v661_v25, 0.0 }
 0x24b   :  { %v638_v37 = vpop.xlane.xlu1 %637 }
 0x24c   :  { %v662_v18 = vadd.f32 %v638_v37, %v1679_v45  ;;  %v841_v37 = vrot.slane %v673_v44, %v1513_v61  ;;  %v837_v45 = vsel %vm720_vm6, %v836_v5, %v832_v13  ;;  %v416_v13 = vcvt.f32.s32 %v1408_v32 }
 0x24e   :  { %v678_v15 = vmax.f32 %v662_v18, 0.0  ;;  %v1579_v18 = vsub.s32 %v778_v46, %v1475_v24 }
 0x28f   :  { %v386_v4 = vpop.xlane.xlu1 %385 }
 0x290   :  { %v387_v33 = vcvt.f32.s32 %v386_v4  ;;  %v675_v4 = vmax.f32 %v659_v59, 0.0  ;;  %v846_v59 = vrot.slane %v674_v50, %v1520_v27  ;;  %v842_v50 = vsel %vm727_vm7, %v841_v37, %v837_v45 }
 0x292   :  { %v390_v48 = vadd.s32 %v389_v20, %v387_v33  ;;  %v851_v20 = vrot.slane %v675_v4, %v1524_v31  ;;  %v847_v5 = vsel %vm734_vm8, %v846_v59, %v842_v50  ;;  %v866_v4 = vrot.slane %v678_v15, %v1537_v19 }
 0x293   :  { %v641_v30 = vpop.xlane.xlu1 %640  ;;  %v1543_v21 = vpop.xlane.xlu0 %497 }
 0x294   :  { %v663_v7 = vadd.f32 %v641_v30, %v1680_v53  ;;  %v691_v44 = vrot.slane %v390_v48, %v1485_v12  ;;  %v1589_v48 = vsub.s32 %v785_v9, %v1475_v24  ;;  %v402_v24 = vcvt.f32.s32 %v1412_v38 }
 0x296   :  { %v679_v33 = vmax.f32 %v663_v7, 0.0  ;;  %v852_v7 = vsel %vm741_vm0, %v851_v20, %v847_v5 }
 0x297   :  { %v644_v41 = vpop.xlane.xlu1 %643  ;;  %v372_v43 = vpop.xlane.xlu0 %371  ;;  %v857_v49 = vsel %vm748_vm9, %v856_v63, %v852_v7 }
 0x298   :  { %v664_v54 = vadd.f32 %v644_v41, %v1681_v58  ;;  %v373_v14 = vcvt.f32.s32 %v372_v43  ;;  %v1683_v58 = vld [vmem:[#allocation14_spill] sm:$0xff] }
 0x29a   :  { %v376_v30 = vadd.s32 %v375_v51, %v373_v14  ;;  %v680_v25 = vmax.f32 %v664_v54, 0.0  ;;  %v861_v51 = vrot.slane %v677_v57, %v1530_v60 }
 0x29b   :  { %v647_v35 = vpop.xlane.xlu1 %646  ;;  %v1571_v34 = vpop.xlane.xlu0 %483 }
 0x29c   :  { %v686_v23 = vrot.slane %v376_v30, %v1494_v0  ;;  %v665_v53 = vadd.f32 %v647_v35, %v1682_v17  ;;  %v871_v0 = vrot.slane %v679_v33, %v1547_v47  ;;  %v876_v46 = vrot.slane %v680_v25, %v1550_v55 }
 0x29d   :  { %v862_v14 = vsel %vm755_vm10, %v861_v51, %v857_v49  ;;  %v417_v33 = vshll.u32 %v416_v13, 16  ;;  %v403_v35 = vshll.u32 %v402_v24, 16  ;;  %v444_v51 = vcvt.f32.s32 %v1436_v10 }
 0x29e   :  { %v693_v8 = vsel %vm692_vm2, %v691_v44, %v686_v23  ;;  %v681_v12 = vmax.f32 %v665_v53, 0.0  ;;  %v867_v37 = vsel %vm762_vm11, %v866_v4, %v862_v14  ;;  %v472_v10 = vcvt.f32.s32 %v1451_v6 }
 0x29f   :  { %v650_v41 = vpop.xlane.xlu1 %649  ;;  %v414_v43 = vpop.xlane.xlu0 %413  ;;  %v872_v59 = vsel %vm769_vm12, %v871_v0, %v867_v37  ;;  %v445_v0 = vshll.u32 %v444_v51, 16  ;;  %v458_v37 = vcvt.f32.s32 %v1439_v26  ;;  %v499_v6 = vcvt.f32.s32 %v1543_v21 }
 0x2a0   :  { %v666_v54 = vadd.f32 %v650_v41, %v1683_v58  ;;  %v881_v1 = vrot.slane %v681_v12, %v1579_v18  ;;  %v877_v9 = vsel %vm776_vm13, %v876_v46, %v872_v59  ;;  %v415_v20 = vcvt.f32.s32 %v414_v43 }
 0x2a1   :  { %v430_v12 = vcvt.f32.s32 %v1431_v42  ;;  %v486_v42 = vcvt.f32.s32 %v1402_v22  ;;  %v514_v59 = vcvt.f32.s32 %v1424_v3  ;;  %v473_v24 = vshll.u32 %v472_v10, 16 }
 0x2a2   :  { %v682_v57 = vmax.f32 %v666_v54, 0.0  ;;  %v882_v45 = vsel %vm783_vm14, %v881_v1, %v877_v9  ;;  %v418_v25 = vadd.s32 %v417_v33, %v415_v20  ;;  %v542_v9 = vcvt.f32.s32 %v1446_v56 }
 0x2a3   :  { %v1597_v15 = vpop.xlane.xlu0 %525  ;;  %v431_v43 = vshll.u32 %v430_v12, 16  ;;  %v459_v20 = vshll.u32 %v458_v37, 16  ;;  %v570_v21 = vcvt.f32.s32 %v1464_v29  ;;  %v584_v12 = vcvt.f32.s32 %v1469_v2 }
 0x2a4   :  { %v886_v30 = vrot.slane %v682_v57, %v1589_v48  ;;  %v705_v53 = vrot.slane %v418_v25, %v1499_v52  ;;  %v500_v57 = vcvt.f32.s32 %v1390_v11  ;;  %v556_v11 = vcvt.f32.s32 %v1459_v62 }
 0x2a5   :  { %v527_v33 = vcvt.f32.s32 %v1597_v15  ;;  %v543_v25 = vshll.u32 %v542_v9, 16 }
 0x2a6   :  { %v887_v63 = vsel %vm790_vm15, %v886_v30, %v882_v45  ;;  %v487_v45 = vshll.u32 %v486_v42, 16  ;;  %v501_v26 = vshll.u32 %v500_v57, 16 }
 0x2a7   :  { %889 = vst [vmem:[%s1657_s4] sm:$0x1] %v887_v63  ;;  %v400_v32 = vpop.xlane.xlu0 %399 }
 0x2a8   :  { %v401_v44 = vcvt.f32.s32 %v400_v32  ;;  %v515_v32 = vshll.u32 %v514_v59, 16  ;;  %v502_v56 = vadd.s32 %v501_v26, %v499_v6 }
 0x2aa   :  { %v404_v23 = vadd.s32 %v403_v35, %v401_v44 }
 0x2ab   :  { %v512_v38 = vpop.xlane.xlu0 %511 }
 0x2ac   :  { %v698_v17 = vrot.slane %v404_v23, %v1490_v28  ;;  %v513_v22 = vcvt.f32.s32 %v512_v38 }
 0x2ae   :  { %v700_v50 = vsel %vm699_vm3, %v698_v17, %v693_v8  ;;  %v516_v17 = vadd.s32 %v515_v32, %v513_v22 }
 0x2af   :  { %v442_v5 = vpop.xlane.xlu0 %441  ;;  %v707_v4 = vsel %vm706_vm4, %v705_v53, %v700_v50  ;;  %v557_v50 = vshll.u32 %v556_v11, 16 }
 0x2b0   :  { %v443_v7 = vcvt.f32.s32 %v442_v5 }
 0x2b2   :  { %v446_v46 = vadd.s32 %v445_v0, %v443_v7  ;;  %v747_v7 = vrot.slane %v502_v56, %v1527_v36 }
 0x2b3   :  { %v428_v41 = vpop.xlane.xlu0 %427 }
 0x2b4   :  { %v429_v49 = vcvt.f32.s32 %v428_v41  ;;  %v719_v52 = vrot.slane %v446_v46, %v1508_v16  ;;  %v528_v16 = vcvt.f32.s32 %v1420_v40 }
 0x2b6   :  { %v432_v58 = vadd.s32 %v431_v43, %v429_v49  ;;  %v529_v44 = vshll.u32 %v528_v16, 16  ;;  %v571_v43 = vshll.u32 %v570_v21, 16 }
 0x2b7   :  { %v540_v54 = vpop.xlane.xlu0 %539 }
 0x2b8   :  { %v712_v28 = vrot.slane %v432_v58, %v1505_v39  ;;  %v485_v39 = vcvt.f32.s32 %v1571_v34  ;;  %v541_v35 = vcvt.f32.s32 %v540_v54  ;;  %v530_v51 = vadd.s32 %v529_v44, %v527_v33 }
 0x2ba   :  { %v714_v8 = vsel %vm713_vm5, %v712_v28, %v707_v4  ;;  %v488_v34 = vadd.s32 %v487_v45, %v485_v39  ;;  %v544_v5 = vadd.s32 %v543_v25, %v541_v35 }
 0x2bb   :  { %v470_v14 = vpop.xlane.xlu0 %469  ;;  %v721_v1 = vsel %vm720_vm6, %v719_v52, %v714_v8  ;;  %v585_v8 = vshll.u32 %v584_v12, 16 }
 0x2bc   :  { %v471_v13 = vcvt.f32.s32 %v470_v14  ;;  %v740_v15 = vrot.slane %v488_v34, %v1524_v31  ;;  %v768_v58 = vrot.slane %v544_v5, %v1547_v47 }
 0x2be   :  { %v474_v3 = vadd.s32 %v473_v24, %v471_v13 }
 0x2bf   :  { %v456_v30 = vpop.xlane.xlu0 %455 }
 0x2c0   :  { %v457_v63 = vcvt.f32.s32 %v456_v30  ;;  %v733_v62 = vrot.slane %v474_v3, %v1520_v27  ;;  %v761_v27 = vrot.slane %v530_v51, %v1537_v19 }
 0x2c2   :  { %v460_v40 = vadd.s32 %v459_v20, %v457_v63 }
 0x2c3   :  { %v554_v23 = vpop.xlane.xlu0 %553 }
 0x2c4   :  { %v726_v38 = vrot.slane %v460_v40, %v1513_v61  ;;  %v555_v53 = vcvt.f32.s32 %v554_v23  ;;  %v754_v61 = vrot.slane %v516_v17, %v1530_v60 }
 0x2c6   :  { %v728_v4 = vsel %vm727_vm7, %v726_v38, %v721_v1  ;;  %v558_v29 = vadd.s32 %v557_v50, %v555_v53 }
 0x2c7   :  { %v735_v0 = vsel %vm734_vm8, %v733_v62, %v728_v4  ;;  %v568_v41 = vpop.xlane.xlu0 %567 }
 0x2c8   :  { %v742_v49 = vsel %vm741_vm0, %v740_v15, %v735_v0  ;;  %v569_v46 = vcvt.f32.s32 %v568_v41  ;;  %v775_v28 = vrot.slane %v558_v29, %v1550_v55 }
 0x2c9   :  { %v749_v31 = vsel %vm748_vm9, %v747_v7, %v742_v49 }
 0x2ca   :  { %v756_v2 = vsel %vm755_vm10, %v754_v61, %v749_v31  ;;  %v572_v54 = vadd.s32 %v571_v43, %v569_v46 }
 0x2cb   :  { %v763_v36 = vsel %vm762_vm11, %v761_v27, %v756_v2  ;;  %v582_v52 = vpop.xlane.xlu0 %581 }
 0x2cc   :  { %v770_v60 = vsel %vm769_vm12, %v768_v58, %v763_v36  ;;  %v782_v10 = vrot.slane %v572_v54, %v1579_v18  ;;  %v583_v14 = vcvt.f32.s32 %v582_v52 }
 0x2cd   :  { %v777_v19 = vsel %vm776_vm13, %v775_v28, %v770_v60 }
 0x2ce   :  { %v784_v1 = vsel %vm783_vm14, %v782_v10, %v777_v19  ;;  %v586_v42 = vadd.s32 %v585_v8, %v583_v14 }
 0x2d0   :  { %v789_v47 = vrot.slane %v586_v42, %v1589_v48 }
 0x2d2   :  { %v791_v37 = vsel %vm790_vm15, %v789_v47, %v784_v1 }
 0x2d3   :  { %792 = vst [vmem:[%s1656_s3] sm:$0x1] %v791_v37 }
 0x2d4   :  { %898 = vsyncpa [#allocation3], 1 }
 0x2d5   :  { %899 = vsyncpa [#allocation5], 1 }

</bundles_post_ra>
